<compile_context>
chip_gen: v5e
topology: v5e:2x2
jax: 0.10.0
libtpu: 0.0.40
codegen_flags: <defaults>
</compile_context>

<pallas_src>
import jax
import jax.numpy as jnp
from jax import lax
from jax.experimental import pallas as pl
from jax.experimental.pallas import tpu as pltpu


# ------------------------------ device helpers ------------------------------ #

def _is_v7x():
    try:
        return "v7" in jax.devices()[0].device_kind.lower()
    except Exception:
        return False


def _vmem_limit_bytes():
    # v7x: 64 MiB physical VMEM per TensorCore -> leave headroom at 48 MiB.
    # v5e/v6e: 128 MiB physical -> raise well above the scoped default.
    return (48 if _is_v7x() else 100) * 1024 * 1024


def _pick_t_chunk(T, B, H, requested=None):
    """Time chunk for the recurrence call.  Must divide T; sized from VMEM budget."""
    if requested is not None and requested > 0 and T % requested == 0:
        return requested
    budget = _vmem_limit_bytes() // 2
    # Double-buffered: 2 gate in-streams (B x 4H f32) + 2 hseq out-streams (B x H f32).
    per_t = 2 * (2 * B * 4 * H + 2 * B * H) * 4
    cap = max(1, budget // max(per_t, 1))
    tt = int(min(T, 128, cap))
    while tt > 1 and T % tt:
        tt -= 1
    return max(1, tt)


def _pick_row_chunk(M, D, G):
    """Row chunk for the hoisted projection matmul, decoupled from t_chunk."""
    budget = _vmem_limit_bytes() // 2
    per_row = (D + G) * 4 * 2                      # double-buffered x block + out block
    cap = max(8, (budget - D * G * 4) // max(per_row, 1))
    target = int(min(M, 512, cap))
    if target >= M:
        return M
    target -= target % 8
    for c in range(max(target, 8), 7, -8):         # multiple of 8 (sublane) divisor
        if M % c == 0:
            return c
    return M


# ----------------------------- Pallas kernels ------------------------------ #

def matmul_bias_kernel(x_ref, w_ref, b_ref, o_ref):
    """o = x @ w + b with bf16 MXU operands and f32 accumulation."""
    o_ref[...] = (jnp.dot(x_ref[...].astype(jnp.bfloat16),
                          w_ref[...].astype(jnp.bfloat16),
                          preferred_element_type=jnp.float32) + b_ref[...])


def dual_matmul_bias_kernel(xa_ref, xb_ref, wa_ref, wb_ref, b_ref, o_ref):
    """o = xa @ wa + xb @ wb + b (consumes the prev layer's fwd/bwd pair directly)."""
    o_ref[...] = (jnp.dot(xa_ref[...].astype(jnp.bfloat16),
                          wa_ref[...].astype(jnp.bfloat16),
                          preferred_element_type=jnp.float32)
                  + jnp.dot(xb_ref[...].astype(jnp.bfloat16),
                            wb_ref[...].astype(jnp.bfloat16),
                            preferred_element_type=jnp.float32)
                  + b_ref[...])


def _gate_masks(B, G, H):
    """Lane masks for the single-tanh gate activation (PyTorch order i, f, g, o)."""
    lane = lax.broadcasted_iota(jnp.int32, (B, G), dimension=1)
    is_g = (lane >= 2 * H) & (lane < 3 * H)
    pre = jnp.where(is_g, 1.0, 0.5).astype(jnp.float32)   # tanh(x) vs 0.5*tanh(x/2)+0.5
    off = jnp.where(is_g, 0.0, 0.5).astype(jnp.float32)
    return pre, off


def bilstm_fused_kernel(gf_ref, gb_ref, whh_ref, hf_ref, hb_ref, hlast_ref, h_sc, c_sc):
    """Fused fwd+bwd LSTM recurrence over one time chunk (single-TC parts).

    grid = (num_chunks,): forward walks gate chunks 0..nc-1; the backward gate
    chunks arrive already reversed via their index_map (nc-1-c), and the in-chunk
    time index is reversed locally.  h_sc / c_sc (2, B, H) carry both directions'
    state across chunks.
    """
    Tt, B, G = gf_ref.shape
    H = h_sc.shape[-1]

    @pl.when(pl.program_id(0) == 0)
    def _():
        h_sc[...] = jnp.zeros_like(h_sc)
        c_sc[...] = jnp.zeros_like(c_sc)

    # Loop-invariants hoisted off the serial per-step critical path.
    whh_f = whh_ref[0]
    whh_b = whh_ref[1]
    pre, off = _gate_masks(B, G, H)

    def gate_act(x):
        # ONE EUP tanh pass over all 4H lanes (sigmoid folded into tanh).
        return jnp.tanh(x * pre) * pre + off

    def step(s, carry):
        tf = s
        tb = Tt - 1 - s
        g0 = gf_ref[tf] + jnp.dot(h_sc[0], whh_f, preferred_element_type=jnp.float32)
        g1 = gb_ref[tb] + jnp.dot(h_sc[1], whh_b, preferred_element_type=jnp.float32)
        a0 = gate_act(g0)
        a1 = gate_act(g1)
        c0 = a0[:, H:2 * H] * c_sc[0] + a0[:, 0:H] * a0[:, 2 * H:3 * H]
        c1 = a1[:, H:2 * H] * c_sc[1] + a1[:, 0:H] * a1[:, 2 * H:3 * H]
        h0 = a0[:, 3 * H:] * jnp.tanh(c0)
        h1 = a1[:, 3 * H:] * jnp.tanh(c1)
        c_sc[0] = c0
        h_sc[0] = h0
        hf_ref[tf] = h0
        c_sc[1] = c1
        h_sc[1] = h1
        hb_ref[tb] = h1
        return carry

    lax.fori_loop(0, Tt, step, 0, unroll=2 if Tt % 2 == 0 else 1)
    hlast_ref[...] = h_sc[...]


def bilstm_split_kernel(gates_ref, whh_ref, hseq_ref, hlast_ref, h_sc, c_sc):
    """Per-direction recurrence: grid=(2, nc), direction axis parallel (v7x megacore)."""
    d = pl.program_id(0)
    Tt, B, G = gates_ref.shape
    H = h_sc.shape[-1]

    @pl.when(pl.program_id(1) == 0)
    def _():
        h_sc[...] = jnp.zeros_like(h_sc)
        c_sc[...] = jnp.zeros_like(c_sc)

    whh = whh_ref[...]
    pre, off = _gate_masks(B, G, H)

    def step(s, carry):
        t = jnp.where(d == 0, s, Tt - 1 - s)
        gates = gates_ref[t] + jnp.dot(h_sc[...], whh, preferred_element_type=jnp.float32)
        act = jnp.tanh(gates * pre) * pre + off          # single EUP tanh pass
        i = act[:, 0:H]
        f = act[:, H:2 * H]
        g = act[:, 2 * H:3 * H]
        o = act[:, 3 * H:]
        c_new = f * c_sc[...] + i * g
        h_new = o * jnp.tanh(c_new)
        c_sc[...] = c_new
        h_sc[...] = h_new
        hseq_ref[t] = h_new
        return carry

    lax.fori_loop(0, Tt, step, 0, unroll=2 if Tt % 2 == 0 else 1)
    hlast_ref[...] = h_sc[...]


# ------------------------------ kernel wrappers ----------------------------- #

def run_matmul_bias(x2d, w, b, row_chunk):
    M, D = x2d.shape
    G = w.shape[1]
    return pl.pallas_call(
        matmul_bias_kernel,
        grid=(M // row_chunk,),
        out_shape=jax.ShapeDtypeStruct((M, G), jnp.float32),
        in_specs=[pl.BlockSpec((row_chunk, D), lambda m: (m, 0)),
                  pl.BlockSpec((D, G), lambda m: (0, 0)),
                  pl.BlockSpec((1, G), lambda m: (0, 0))],
        out_specs=pl.BlockSpec((row_chunk, G), lambda m: (m, 0)),
        compiler_params=pltpu.CompilerParams(
            dimension_semantics=("parallel",),
            vmem_limit_bytes=_vmem_limit_bytes()),
    )(x2d, w, b)


def run_dual_matmul_bias(xa2d, xb2d, wa, wb, b, row_chunk):
    M, Da = xa2d.shape
    Db = xb2d.shape[1]
    G = wa.shape[1]
    return pl.pallas_call(
        dual_matmul_bias_kernel,
        grid=(M // row_chunk,),
        out_shape=jax.ShapeDtypeStruct((M, G), jnp.float32),
        in_specs=[pl.BlockSpec((row_chunk, Da), lambda m: (m, 0)),
                  pl.BlockSpec((row_chunk, Db), lambda m: (m, 0)),
                  pl.BlockSpec((Da, G), lambda m: (0, 0)),
                  pl.BlockSpec((Db, G), lambda m: (0, 0)),
                  pl.BlockSpec((1, G), lambda m: (0, 0))],
        out_specs=pl.BlockSpec((row_chunk, G), lambda m: (m, 0)),
        compiler_params=pltpu.CompilerParams(
            dimension_semantics=("parallel",),
            vmem_limit_bytes=_vmem_limit_bytes()),
    )(xa2d, xb2d, wa, wb, b)


def run_bilstm_layer(gates_tm, w_hh_pair, t_chunk, split_directions):
    """gates_tm: (T, B, 8H) packed [fwd | bwd] gate pre-activations.
    w_hh_pair: (2, H, 4H).  Returns hseq_fwd (T,B,H), hseq_bwd (T,B,H), hlast (2,B,H)."""
    T, B, _ = gates_tm.shape
    H = w_hh_pair.shape[1]
    # Gate blocks are 4H lanes wide (not the full 8H), so 4H must be lane-aligned.
    assert (4 * H) % 128 == 0, "hidden_size must be a multiple of 32"
    # TODO(synk): pad H (and W_hh / biases) to a multiple of 32 instead of asserting.
    nc = T // t_chunk

    if split_directions:
        # v7x: one direction per TensorCore (direction axis "parallel").
        def time_block(d, c):
            return c * (1 - d) + (nc - 1 - c) * d

        hseq, hlast = pl.pallas_call(
            bilstm_split_kernel,
            grid=(2, nc),
            out_shape=(jax.ShapeDtypeStruct((2, T, B, H), jnp.float32),
                       jax.ShapeDtypeStruct((2, B, H), jnp.float32)),
            in_specs=[pl.BlockSpec((t_chunk, B, 4 * H),
                                   lambda d, c: (time_block(d, c), 0, d)),
                      pl.BlockSpec((None, H, 4 * H), lambda d, c: (d, 0, 0))],
            out_specs=(pl.BlockSpec((None, t_chunk, B, H),
                                    lambda d, c: (d, time_block(d, c), 0, 0)),
                       pl.BlockSpec((None, B, H), lambda d, c: (d, 0, 0))),
            scratch_shapes=[pltpu.VMEM((B, H), jnp.float32),
                            pltpu.VMEM((B, H), jnp.float32)],
            compiler_params=pltpu.CompilerParams(
                dimension_semantics=("parallel", "arbitrary"),
                vmem_limit_bytes=_vmem_limit_bytes()),
        )(gates_tm, w_hh_pair)
        return hseq[0], hseq[1], hlast

    # v5e/v6e: fused directions, halved serial chain.  The same gates array is
    # passed twice; the bwd stream's index_map reverses the chunk order.
    hf, hb, hlast = pl.pallas_call(
        bilstm_fused_kernel,
        grid=(nc,),
        out_shape=(jax.ShapeDtypeStruct((T, B, H), jnp.float32),
                   jax.ShapeDtypeStruct((T, B, H), jnp.float32),
                   jax.ShapeDtypeStruct((2, B, H), jnp.float32)),
        in_specs=[pl.BlockSpec((t_chunk, B, 4 * H), lambda c: (c, 0, 0)),
                  pl.BlockSpec((t_chunk, B, 4 * H), lambda c: (nc - 1 - c, 0, 1)),
                  pl.BlockSpec((2, H, 4 * H), lambda c: (0, 0, 0))],
        out_specs=(pl.BlockSpec((t_chunk, B, H), lambda c: (c, 0, 0)),
                   pl.BlockSpec((t_chunk, B, H), lambda c: (nc - 1 - c, 0, 0)),
                   pl.BlockSpec((2, B, H), lambda c: (0, 0, 0))),
        scratch_shapes=[pltpu.VMEM((2, B, H), jnp.float32),
                        pltpu.VMEM((2, B, H), jnp.float32)],
        compiler_params=pltpu.CompilerParams(
            dimension_semantics=("arbitrary",),
            vmem_limit_bytes=_vmem_limit_bytes()),
    )(gates_tm, gates_tm, w_hh_pair)
    return hf, hb, hlast


# ------------------------------ model forward ------------------------------- #

def lstm_model_forward(params, tokens, t_chunk=None):
    """Mirrors LSTM.forward: returns (linear(x[:, -1, :]), outputs, h_n)."""
    B, T = tokens.shape
    H = params["lstm"][0]["w_hh"].shape[1]
    split_dirs = _is_v7x()

    # Embedding lookup is glue (gather); the matmul hot path is in Pallas.
    x = jnp.take(params["embedding"], tokens, axis=0)            # (B, T, E)
    x_tm = jnp.transpose(x, (1, 0, 2))                           # (T, B, E): single boundary transpose
    # Pad batch to a sublane multiple so recurrent tiles are (8, ...)-aligned.
    # (Padded rows carry bias-only garbage state; sliced off before returning.)
    Bp = max(8, ((B + 7) // 8) * 8)
    if Bp != B:
        x_tm = jnp.pad(x_tm, ((0, 0), (0, Bp - B), (0, 0)))
    tt = _pick_t_chunk(T, Bp, H, t_chunk)
    M = T * Bp

    h_n_parts = []
    hf = hb = None
    for li, lp in enumerate(params["lstm"]):
        if li == 0:
            x2d = x_tm.reshape(M, -1)
            rows = _pick_row_chunk(M, x2d.shape[1], 8 * H)
            gates2d = run_matmul_bias(x2d, lp["w_ih"], lp["b"], rows)
        else:
            rows = _pick_row_chunk(M, 2 * H, 8 * H)
            gates2d = run_dual_matmul_bias(hf.reshape(M, H), hb.reshape(M, H),
                                           lp["w_ih"][:H], lp["w_ih"][H:],
                                           lp["b"], rows)
        gates_tm = gates2d.reshape(T, Bp, 8 * H)                 # contiguous reshape (no transpose)
        hf, hb, hlast = run_bilstm_layer(gates_tm, lp["w_hh"], tt, split_dirs)
        h_n_parts.append(hlast[:, :B])
        # TODO(synk): inter-layer dropout is training-only in nn.LSTM; eval forward is identity.

    # Single batch_first boundary transform for the returned `outputs`.
    outputs = jnp.transpose(jnp.concatenate([hf, hb], axis=-1), (1, 0, 2))[:B]  # (B, T, 2H)
    h_n = jnp.concatenate(h_n_parts, axis=0)                     # (2*L, B, H), PyTorch layout

    # Linear head computed directly from the last-timestep hidden states, not the
    # relayouted `outputs`.  Degenerate (B,2H)@(2H,1) matmul -> plain JAX.
    w_lin_t, b_lin = params["linear"]
    last = jnp.concatenate([hf[T - 1, :B], hb[T - 1, :B]], axis=-1)
    logits = last @ w_lin_t + b_lin
    return logits, outputs, h_n


# ----------------------------- parameter setup ------------------------------ #

def init_params(key, vocab_size, embedding_dim, hidden_size, num_layers):
    H = hidden_size
    params = {}
    key, k_emb = jax.random.split(key)
    params["embedding"] = jax.random.normal(
        k_emb, (vocab_size, embedding_dim), jnp.float32)
    stdv = 1.0 / float(H) ** 0.5
    layers = []
    for layer in range(num_layers):
        in_dim = embedding_dim if layer == 0 else 2 * H
        w_ih_dirs, w_hh_dirs, b_dirs = [], [], []
        for _direction in range(2):
            key, k1, k2, k3, k4 = jax.random.split(key, 5)
            w_ih = jax.random.uniform(k1, (4 * H, in_dim), jnp.float32, -stdv, stdv)
            w_hh = jax.random.uniform(k2, (4 * H, H), jnp.float32, -stdv, stdv)
            b_ih = jax.random.uniform(k3, (4 * H,), jnp.float32, -stdv, stdv)
            b_hh = jax.random.uniform(k4, (4 * H,), jnp.float32, -stdv, stdv)
            w_ih_dirs.append(w_ih.T)                             # (in_dim, 4H)
            w_hh_dirs.append(w_hh.T)                             # (H, 4H)
            b_dirs.append(b_ih + b_hh)
        layers.append({
            "w_ih": jnp.concatenate(w_ih_dirs, axis=1),          # (in_dim, 8H) = [fwd | bwd]
            "w_hh": jnp.stack(w_hh_dirs, axis=0),                # (2, H, 4H)
            "b": jnp.concatenate(b_dirs, axis=0).reshape(1, 8 * H),
        })
    params["lstm"] = layers
    key, kw, kb = jax.random.split(key, 3)
    bound = 1.0 / float(2 * H) ** 0.5
    w_lin = jax.random.uniform(kw, (1, 2 * H), jnp.float32, -bound, bound)
    b_lin = jax.random.uniform(kb, (1,), jnp.float32, -bound, bound)
    params["linear"] = (w_lin.T, b_lin.reshape(1, 1))
    return params


# ------------------------------ pure-JAX reference --------------------------- #
# Mirrors the kernel's bf16 MXU operands for the hoisted input projection
# (f32 accumulation and f32 recurrence), so the kernel can be checked tightly.

def _ref_lstm_dir_from_gates(g_tm, w_hh_t):
    T, B, _ = g_tm.shape
    H = w_hh_t.shape[0]

    def step(carry, g_t):
        h, c = carry
        gates = g_t + jnp.dot(h, w_hh_t, precision=lax.Precision.HIGHEST)
        i = jax.nn.sigmoid(gates[:, :H])
        f = jax.nn.sigmoid(gates[:, H:2 * H])
        g = jnp.tanh(gates[:, 2 * H:3 * H])
        o = jax.nn.sigmoid(gates[:, 3 * H:])
        c = f * c + i * g
        h = o * jnp.tanh(c)
        return (h, c), h

    (h, _c), hseq = lax.scan(
        step, (jnp.zeros((B, H), jnp.float32), jnp.zeros((B, H), jnp.float32)), g_tm)
    return hseq, h


def ref_forward(params, tokens):
    x = jnp.take(params["embedding"], tokens, axis=0)
    H = params["lstm"][0]["w_hh"].shape[1]
    h_n_list = []
    for lp in params["lstm"]:
        xq = x.astype(jnp.bfloat16).astype(jnp.float32)
        wq = lp["w_ih"].astype(jnp.bfloat16).astype(jnp.float32)
        gates = jnp.einsum("btd,dg->btg", xq, wq,
                           precision=lax.Precision.HIGHEST) + lp["b"]
        dir_outs = []
        for d in range(2):
            g_d = gates[..., d * 4 * H:(d + 1) * 4 * H]
            g_tm = jnp.transpose(g_d, (1, 0, 2))
            if d == 1:
                g_tm = jnp.flip(g_tm, axis=0)
            hseq, hlast = _ref_lstm_dir_from_gates(g_tm, lp["w_hh"][d])
            hseq = jnp.transpose(hseq, (1, 0, 2))
            if d == 1:
                hseq = jnp.flip(hseq, axis=1)
            dir_outs.append(hseq)
            h_n_list.append(hlast)
        x = jnp.concatenate(dir_outs, axis=-1)
    outputs = x
    h_n = jnp.stack(h_n_list, axis=0)
    w_lin_t, b_lin = params["linear"]
    logits = outputs[:, -1, :] @ w_lin_t + b_lin
    return logits, outputs, h_n


# ----------------------------------- main ----------------------------------- #

if __name__ == "__main__":
    vocab_size, embedding_dim, hidden_size, num_layers = 32, 16, 32, 2
    batch, seq = 2, 8

    key = jax.random.PRNGKey(0)
    k_params, k_tok = jax.random.split(key)
    params = init_params(k_params, vocab_size, embedding_dim, hidden_size, num_layers)
    tokens = jax.random.randint(k_tok, (batch, seq), 0, vocab_size, dtype=jnp.int32)

    # t_chunk=4 exercises the multi-chunk path (pipelined DMA + carried h/c scratch).
    logits, outputs, h_n = jax.block_until_ready(
        lstm_model_forward(params, tokens, t_chunk=4))

    assert logits.shape == (batch, 1)
    assert outputs.shape == (batch, seq, 2 * hidden_size)
    assert h_n.shape == (2 * num_layers, batch, hidden_size)

    r_logits, r_outputs, r_hn = jax.block_until_ready(ref_forward(params, tokens))
    assert jnp.allclose(logits, r_logits, atol=2e-3, rtol=2e-3)
    assert jnp.allclose(outputs, r_outputs, atol=2e-3, rtol=2e-3)
    assert jnp.allclose(h_n, r_hn, atol=2e-3, rtol=2e-3)

    print("KERNEL_OK")
</pallas_src>

<mosaic_0001>
module attributes {stable_mosaic.version = 11 : i64} {
  func.func @matmul_bias_kernel(%arg0: i32, %arg1: memref<64x16xf32, #tpu.memory_space<vmem>>, %arg2: memref<16x256xf32, #tpu.memory_space<vmem>>, %arg3: memref<1x256xf32, #tpu.memory_space<vmem>>, %arg4: memref<64x256xf32, #tpu.memory_space<vmem>>) attributes {dimension_semantics = [#tpu.dimension_semantics<parallel>], iteration_bounds = array<i64: 1>, scalar_prefetch = 0 : i64, scratch_operands = 0 : i64, tpu.core_type = #tpu.core_type<tc>, window_params = [{transform_indices = @transform_0, window_bounds = array<i64: 64, 16>}, {pipeline_mode = #tpu.pipeline_mode<synchronous>, transform_indices = @transform_1, window_bounds = array<i64: 16, 256>}, {pipeline_mode = #tpu.pipeline_mode<synchronous>, transform_indices = @transform_2, window_bounds = array<i64: 1, 256>}, {transform_indices = @transform_3, window_bounds = array<i64: 64, 256>}]} {
    %c0 = arith.constant 0 : index
    %c0_0 = arith.constant 0 : index
    %0 = vector.load %arg1[%c0, %c0_0] : memref<64x16xf32, #tpu.memory_space<vmem>>, vector<64x16xf32>
    %1 = arith.truncf %0 : vector<64x16xf32> to vector<64x16xbf16>
    %c0_1 = arith.constant 0 : index
    %c0_2 = arith.constant 0 : index
    %2 = vector.load %arg2[%c0_1, %c0_2] : memref<16x256xf32, #tpu.memory_space<vmem>>, vector<16x256xf32>
    %3 = arith.truncf %2 : vector<16x256xf32> to vector<16x256xbf16>
    %cst = arith.constant dense<0.000000e+00> : vector<64x256xf32>
    %4 = tpu.matmul %1, %3, %cst {dimension_numbers = #tpu.dot_dimension_numbers<[1], [0], [0], [1], [0, 0, 1, 1], [], []>} : vector<64x16xbf16>, vector<16x256xbf16>, vector<64x256xf32> -> vector<64x256xf32>
    %c0_3 = arith.constant 0 : index
    %c0_4 = arith.constant 0 : index
    %5 = vector.load %arg3[%c0_3, %c0_4] : memref<1x256xf32, #tpu.memory_space<vmem>>, vector<1x256xf32>
    %6 = vector.broadcast %5 : vector<1x256xf32> to vector<64x256xf32>
    %7 = arith.addf %4, %6 : vector<64x256xf32>
    %c0_5 = arith.constant 0 : index
    %c0_6 = arith.constant 0 : index
    %8 = vector.load %arg4[%c0_5, %c0_6] : memref<64x256xf32, #tpu.memory_space<vmem>>, vector<64x256xf32>
    tpu.vector_store %arg4[%c0_5, %c0_6], %7 {strides = array<i32>} : memref<64x256xf32, #tpu.memory_space<vmem>>, vector<64x256xf32>,
    return
  }
  func.func @transform_0(%arg0: i32) -> (i32, i32) {
    %c0_i32 = arith.constant 0 : i32
    %c0_i32_0 = arith.constant 0 : i32
    return %arg0, %c0_i32 : i32, i32
  }
  func.func @transform_1(%arg0: i32) -> (i32, i32) {
    %c0_i32 = arith.constant 0 : i32
    %c0_i32_0 = arith.constant 0 : i32
    %c0_i32_1 = arith.constant 0 : i32
    return %c0_i32, %c0_i32_0 : i32, i32
  }
  func.func @transform_2(%arg0: i32) -> (i32, i32) {
    %c0_i32 = arith.constant 0 : i32
    %c0_i32_0 = arith.constant 0 : i32
    %c0_i32_1 = arith.constant 0 : i32
    return %c0_i32, %c0_i32_0 : i32, i32
  }
  func.func @transform_3(%arg0: i32) -> (i32, i32) {
    %c0_i32 = arith.constant 0 : i32
    %c0_i32_0 = arith.constant 0 : i32
    return %arg0, %c0_i32 : i32, i32
  }
}

</mosaic_0001>

<bundles_post_ra>
// kernel: tpu_custom_call.1
= control target key start
LH: loop header
LB: loop body
LE: loop exit
PB: predicated region body
PF: predicated region fallthrough
CT: control target
= control target key end

     0   :  { %vm40_vm0 = vcmask 130048   ;;  %s257_s0 = inlined_call_operand.vmem [shape: f32[64,16], index: 0, kind: input, shape index: {}]   ;;  %s258_s1 = inlined_call_operand.vmem [shape: f32[16,256], index: 1, kind: input, shape index: {}]   ;;  %s259_s2 = inlined_call_operand.vmem [shape: f32[1,256], index: 2, kind: input, shape index: {}]   ;;  %s260_s3 = inlined_call_operand.hbm [shape: f32[64,256], index: 3, kind: output, shape index: {}]  }
   0x1   :  { %v28_v0 = vld [vmem:[%s258_s1] sm:$0xff]  ;;  %v30_v1 = vld [vmem:[%s258_s1 + $0x10] sm:$0xff]  ;;  %v29_v2 = vld [vmem:[%s258_s1 + $0x8] sm:$0xff] }
   0x2   :  { %v32_v3 = vpack.c.bf16 %v30_v1, %v28_v0  ;;  %v31_v4 = vld [vmem:[%s258_s1 + $0x18] sm:$0xff]  ;;  %v16_v5 = vld [vmem:[%s257_s0] sm:$0xff]  ;;  %v17_v6 = vld [vmem:[%s257_s0 + $0x8] sm:$0xff] }
   0x3   :  { %v33_v7 = vpack.c.bf16 %v31_v4, %v29_v2  ;;  %v24_v8 = vpack.c.bf16 %v17_v6, %v16_v5  ;;  %v20_v9 = vld [vmem:[%s257_s0 + $0x20] sm:$0xff]  ;;  %v21_v10 = vld [vmem:[%s257_s0 + $0x28] sm:$0xff] }
   0x4   :  { %60 = vmatpush.bf16.msra.mxu0 %v32_v3  ;;  %153 = vmatpush.bf16.msra.mxu2 %v32_v3  ;;  %v26_v11 = vpack.c.bf16 %v21_v10, %v20_v9 }
   0x5   :  { %89 = vmatpush.bf16.msra.mxu1 %v33_v7  ;;  %154 = vmatpush.bf16.msra.mxu3 %v33_v7 }
   0x6   :  { %8 = vsyncpa [#allocation3], 0  ;;  %v18_v12 = vld [vmem:[%s257_s0 + $0x10] sm:$0xff]  ;;  %v19_v13 = vld [vmem:[%s257_s0 + $0x18] sm:$0xff]  ;;  %s133_s12 = sshll.u32 %s260_s3, 4  ;;  %s185_s13 = smov 256   ;;  %s134_s12 = int_to_ptr.hbm [resolvable:$true] %s133_s12 }
   0x7   :  { %145 = vmatmul.msk.bf16.vlgmr.msra.gmra.mxu0 %vm40_vm0, %v24_v8  ;;  %147 = vmatmul.msk.bf16.vlgmr.msra.gmra.mxu2 %vm40_vm0, %v26_v11  ;;  %v22_v14 = vld [vmem:[%s257_s0 + $0x30] sm:$0xff]  ;;  %v23_v15 = vld [vmem:[%s257_s0 + $0x38] sm:$0xff]  ;;  %v25_v16 = vpack.c.bf16 %v19_v13, %v18_v12  ;;  %v34_v18 = vld [vmem:[%s259_s2] sm:$0x3]  ;;  %s184_s0 = smov [#allocation2]   ;;  %s186_s14 = smov 16  }
   0x8   :  { %149 = vmatmul.msk.bf16.vlgmr.msra.gmra.mxu1 %vm40_vm0, %v24_v8  ;;  %151 = vmatmul.msk.bf16.vlgmr.msra.gmra.mxu3 %vm40_vm0, %v26_v11  ;;  %v27_v17 = vpack.c.bf16 %v23_v15, %v22_v14  ;;  %v36_v19 = vperm.slane %v34_v18, 0  ;;  %v37_v20 = vperm.slane %v34_v18, 1  ;;  %s131_s2 = sshll.u32 %s184_s0, 4  ;;  %s132_s2 = int_to_ptr.vmem [resolvable:$true] %s131_s2 }
  0x17   :  { %146 = vmatmul.msk.bf16.gmra.mxu0 %vm40_vm0, %v25_v16  ;;  %148 = vmatmul.msk.bf16.gmra.mxu2 %vm40_vm0, %v27_v17 }
  0x18   :  { %150 = vmatmul.msk.bf16.gmra.mxu1 %vm40_vm0, %v25_v16  ;;  %152 = vmatmul.msk.bf16.gmra.mxu3 %vm40_vm0, %v27_v17 }
  0x84   :  { %v62_v21 = vpop.f32.mrf.mxu0 }
  0x85   :  { %v63_v22 = vadd.f32 %v62_v21, %v36_v19  ;;  %v91_v23 = vpop.f32.mrf.mxu1 }
  0x86   :  { %v92_v24 = vadd.f32 %v91_v23, %v37_v20 }
  0x87   :  { %111 = vst [vmem:[#allocation2] sm:$0xff] %v63_v22 }
  0x88   :  { %112 = vst [vmem:[#allocation2 + $0x8] sm:$0xff] %v92_v24 }
  0x8a   :  { %v72_v25 = vpop.f32.mrf.mxu2 }
  0x8b   :  { %v73_v26 = vadd.f32 %v72_v25, %v36_v19  ;;  %v101_v27 = vpop.f32.mrf.mxu3 }
  0x8c   :  { %v102_v28 = vadd.f32 %v101_v27, %v37_v20  ;;  %v64_v29 = vpop.f32.mrf.mxu0 }
  0x8d   :  { %119 = vst [vmem:[#allocation2 + $0x40] sm:$0xff] %v73_v26  ;;  %v65_v30 = vadd.f32 %v64_v29, %v36_v19  ;;  %v93_v31 = vpop.f32.mrf.mxu1 }
  0x8e   :  { %120 = vst [vmem:[#allocation2 + $0x48] sm:$0xff] %v102_v28  ;;  %v94_v32 = vadd.f32 %v93_v31, %v37_v20 }
  0x8f   :  { %113 = vst [vmem:[#allocation2 + $0x10] sm:$0xff] %v65_v30 }
  0x90   :  { %114 = vst [vmem:[#allocation2 + $0x18] sm:$0xff] %v94_v32 }
  0x92   :  { %v74_v33 = vpop.f32.mrf.mxu2 }
  0x93   :  { %v75_v34 = vadd.f32 %v74_v33, %v36_v19  ;;  %v103_v35 = vpop.f32.mrf.mxu3 }
  0x94   :  { %v104_v36 = vadd.f32 %v103_v35, %v37_v20  ;;  %v67_v37 = vpop.f32.mrf.mxu0 }
  0x95   :  { %121 = vst [vmem:[#allocation2 + $0x50] sm:$0xff] %v75_v34  ;;  %v68_v38 = vadd.f32 %v67_v37, %v36_v19  ;;  %v96_v39 = vpop.f32.mrf.mxu1 }
  0x96   :  { %122 = vst [vmem:[#allocation2 + $0x58] sm:$0xff] %v104_v36  ;;  %v97_v40 = vadd.f32 %v96_v39, %v37_v20 }
  0x97   :  { %115 = vst [vmem:[#allocation2 + $0x20] sm:$0xff] %v68_v38 }
  0x98   :  { %116 = vst [vmem:[#allocation2 + $0x28] sm:$0xff] %v97_v40 }
  0x9a   :  { %v77_v41 = vpop.f32.mrf.mxu2 }
  0x9b   :  { %v78_v42 = vadd.f32 %v77_v41, %v36_v19  ;;  %v106_v43 = vpop.f32.mrf.mxu3 }
  0x9c   :  { %v107_v44 = vadd.f32 %v106_v43, %v37_v20  ;;  %v69_v45 = vpop.f32.mrf.mxu0 }
  0x9d   :  { %123 = vst [vmem:[#allocation2 + $0x60] sm:$0xff] %v78_v42  ;;  %v70_v46 = vadd.f32 %v69_v45, %v36_v19  ;;  %v98_v47 = vpop.f32.mrf.mxu1 }
  0x9e   :  { %124 = vst [vmem:[#allocation2 + $0x68] sm:$0xff] %v107_v44  ;;  %v99_v48 = vadd.f32 %v98_v47, %v37_v20 }
  0x9f   :  { %117 = vst [vmem:[#allocation2 + $0x30] sm:$0xff] %v70_v46 }
  0xa0   :  { %118 = vst [vmem:[#allocation2 + $0x38] sm:$0xff] %v99_v48 }
  0xa2   :  { %v79_v49 = vpop.f32.mrf.mxu2 }
  0xa3   :  { %v80_v50 = vadd.f32 %v79_v49, %v36_v19  ;;  %v108_v51 = vpop.f32.mrf.mxu3 }
  0xa4   :  { %v109_v52 = vadd.f32 %v108_v51, %v37_v20 }
  0xa5   :  { %125 = vst [vmem:[#allocation2 + $0x70] sm:$0xff] %v80_v50 }
  0xa6   :  { %126 = vst [vmem:[#allocation2 + $0x78] sm:$0xff] %v109_v52 }
  0xa7   :  { %139 = dma.vmem_to_hbm [thread:$0]  %s132_s2, 2048, %s134_s12, [#allocation3], %s185_s13, %s185_s13, %s186_s14  }
  0xa8   :  { %182 = dma.done.wait [#allocation3], 2048  }
  0xa9   :  { %183 = vsyncadd [#allocation3], 4294965248 }
  0xaa   :  { %144 = vsyncpa [#allocation3], 1 }

</bundles_post_ra>
